<compile_context>
chip_gen: v7x
topology: tpu7x:2x2x1
jax: 0.10.0
libtpu: 0.0.40
codegen_flags: <defaults>
</compile_context>

<pallas_src>
import functools

import numpy as np
import jax
import jax.numpy as jnp
from jax import lax
from jax.experimental import pallas as pl
from jax.experimental.pallas import tpu as pltpu

F32 = jnp.float32
NEG_BIG = -1e30      # large finite negative for padded vocab columns (avoids -inf -> NaN)
LANE = 128


def _round_up(x, m):
    return (x + m - 1) // m * m


def _shift_amount(t):
    """Vectorized shift_tokens(): amount to subtract from each column of an int32
    (..., 4) tensor, computed from the ORIGINAL values (matches the torch code)."""
    col = lax.broadcasted_iota(jnp.int32, t.shape, t.ndim - 1)
    s = jnp.zeros_like(t)
    s = jnp.where((col == 0) & (t >= 560) & (t <= 729), 557, s)   # meta
    s = jnp.where((col == 0) & (t >= 432) & (t <= 559), 260, s)   # pos
    s = jnp.where((col == 1) & (t >= 195) & (t <= 303), 194, s)   # chord
    s = jnp.where((col == 1) & (t >= 131) & (t <= 194), 21, s)    # velocity
    s = jnp.where((col == 2) & (t >= 3) & (t <= 130), 2, s)       # pitch
    s = jnp.where((col == 3) & (t >= 304) & (t <= 431), 303, s)   # duration
    return s


# ----------------------------------------------------------------------------- kernel

def _group_nll_kernel(x_ref, t_ref, w_ref, b_ref, *o_refs, offs, widths):
    # One row-tile: fused  shift_tokens -> logits -> per-group log-softmax -> gather -> nll.
    x = x_ref[...]                                                   # (tm, D)
    # single lane-dense MXU matmul over the concatenated (padded) vocab of all 4 groups
    logits = jnp.dot(x, w_ref[...], preferred_element_type=jnp.float32) + b_ref[...]
    t = t_ref[...]                                                   # (tm, 4) int32
    t = t - _shift_amount(t)                                         # shift_tokens, fused

    for g, o_ref in enumerate(o_refs):
        lg = logits[:, offs[g]:offs[g] + widths[g]]                  # lane-aligned static slice
        m = jnp.max(lg, axis=-1, keepdims=True)
        e = jnp.exp(lg - m)                                          # padded cols (-1e30) -> 0
        logz = m + jnp.log(jnp.sum(e, axis=-1, keepdims=True))
        idx = lax.broadcasted_iota(jnp.int32, lg.shape, 1)
        tgt = t[:, g:g + 1]
        tgt_logit = jnp.sum(jnp.where(idx == tgt, lg, 0.0), axis=-1, keepdims=True)
        o_ref[...] = logz - tgt_logit                                # full-block store


# ----------------------------------------------------------------------------- wrapper

def group_log_softmax(hidden, target, weights, biases, *, block_rows=256):
    """hidden: (L, B, D) f32; target: (L, B, G) int; weights[g]: (D, n_g) (= torch weight.T);
    biases[g]: (n_g,).  Returns nll: (L, B, G) f32."""
    L, B, D = hidden.shape
    n_groups = len(weights)
    M = L * B
    x = hidden.reshape(M, D).astype(F32)
    t = target.reshape(M, n_groups).astype(jnp.int32)

    # Concatenate all group weights along the vocab axis, padding each group to a multiple
    # of 128 lanes.  Pad columns get bias = -1e30 so they contribute nothing to the softmax.
    w_cols, b_cols, offs, widths = [], [], [], []
    off = 0
    for wg, bg in zip(weights, biases):
        n = wg.shape[1]
        npad = _round_up(n, LANE)
        w_cols.append(jnp.pad(wg.astype(F32), ((0, 0), (0, npad - n))))
        b_cols.append(jnp.pad(bg.astype(F32), (0, npad - n), constant_values=NEG_BIG))
        offs.append(off)
        widths.append(npad)
        off += npad
    n_total = off
    w_all = jnp.concatenate(w_cols, axis=1)                          # (D, n_total)
    b_all = jnp.concatenate(b_cols).reshape(1, n_total)              # (1, n_total)

    # Row tiling (rows padded so every grid step sees a full (tm, D) block).
    tm = min(block_rows, _round_up(M, 8))
    m_pad = _round_up(M, tm)
    if m_pad != M:
        x = jnp.pad(x, ((0, m_pad - M), (0, 0)))
        t = jnp.pad(t, ((0, m_pad - M), (0, 0)))                     # pad target 0: valid index
    grid = (m_pad // tm,)

    kernel = functools.partial(_group_nll_kernel, offs=tuple(offs), widths=tuple(widths))
    outs = pl.pallas_call(
        kernel,
        out_shape=tuple(jax.ShapeDtypeStruct((m_pad, 1), F32) for _ in range(n_groups)),
        grid=grid,
        in_specs=[
            pl.BlockSpec((tm, D), lambda i: (i, 0)),                 # hidden rows
            pl.BlockSpec((tm, n_groups), lambda i: (i, 0)),          # raw targets
            pl.BlockSpec((D, n_total), lambda i: (0, 0)),            # concatenated weights
            pl.BlockSpec((1, n_total), lambda i: (0, 0)),            # concatenated biases
        ],
        out_specs=tuple(pl.BlockSpec((tm, 1), lambda i: (i, 0)) for _ in range(n_groups)),
        compiler_params=pltpu.CompilerParams(dimension_semantics=("parallel",)),
    )(x, t, w_all, b_all)

    nll = jnp.concatenate(outs, axis=-1)[:M]
    return nll.reshape(L, B, n_groups)


# ----------------------------------------------------------------------------- pure-JAX reference

def ref_forward(hidden, target, weights, biases):
    P = lax.Precision.HIGHEST
    t = target - _shift_amount(target)                               # shift_tokens
    cols = []
    for g in range(len(weights)):
        logit = jnp.einsum("lbd,dn->lbn", hidden, weights[g], precision=P) + biases[g]
        logp = jax.nn.log_softmax(logit, axis=-1)
        cols.append(-jnp.take_along_axis(logp, t[..., g:g + 1], axis=-1))
    return jnp.concatenate(cols, axis=-1)


# ----------------------------------------------------------------------------- main

if __name__ == "__main__":
    L, B, D = 8, 2, 32
    # per-group vocab sizes large enough to cover the shifted token ranges
    n_tokens = (300, 174, 129, 129)

    key = jax.random.PRNGKey(0)
    kh, kw, kt = jax.random.split(key, 3)

    hidden = jax.random.normal(kh, (L, B, D), F32)

    wkeys = jax.random.split(kw, 2 * len(n_tokens))
    # weights stored pre-transposed: W_g = torch_linear.weight.T  -> shape (D, n_g)
    weights = [jax.random.normal(wkeys[2 * g], (D, n), F32) / jnp.sqrt(float(D))
               for g, n in enumerate(n_tokens)]
    biases = [0.05 * jax.random.normal(wkeys[2 * g + 1], (n,), F32)
              for g, n in enumerate(n_tokens)]

    # raw (un-shifted) targets in the token-id ranges the module expects
    tkeys = jax.random.split(kt, 4)
    ranges = [(432, 730), (131, 304), (3, 131), (304, 432)]
    tcols = [jax.random.randint(tkeys[g], (L, B, 1), lo, hi, jnp.int32)
             for g, (lo, hi) in enumerate(ranges)]
    target = jnp.concatenate(tcols, axis=-1)                         # (L, B, 4)

    nll = group_log_softmax(hidden, target, weights, biases, block_rows=8)
    nll = jax.block_until_ready(nll)

    ref = ref_forward(hidden, target, weights, biases)
    assert nll.shape == (L, B, 4)
    np.testing.assert_allclose(np.asarray(nll), np.asarray(ref), rtol=1e-4, atol=1e-4)
    print("KERNEL_OK")
</pallas_src>

<mosaic_0001>
module attributes {stable_mosaic.version = 11 : i64} {
  func.func @_group_nll_kernel(%arg0: i32, %arg1: memref<8x32xf32, #tpu.memory_space<vmem>>, %arg2: memref<8x4xi32, #tpu.memory_space<vmem>>, %arg3: memref<32x1152xf32, #tpu.memory_space<vmem>>, %arg4: memref<1x1152xf32, #tpu.memory_space<vmem>>, %arg5: memref<8x1xf32, #tpu.memory_space<vmem>>, %arg6: memref<8x1xf32, #tpu.memory_space<vmem>>, %arg7: memref<8x1xf32, #tpu.memory_space<vmem>>, %arg8: memref<8x1xf32, #tpu.memory_space<vmem>>) attributes {dimension_semantics = [#tpu.dimension_semantics<parallel>], iteration_bounds = array<i64: 2>, scalar_prefetch = 0 : i64, scratch_operands = 0 : i64, tpu.core_type = #tpu.core_type<tc>, window_params = [{transform_indices = @transform_0, window_bounds = array<i64: 8, 32>}, {transform_indices = @transform_1, window_bounds = array<i64: 8, 4>}, {pipeline_mode = #tpu.pipeline_mode<synchronous>, transform_indices = @transform_2, window_bounds = array<i64: 32, 1152>}, {pipeline_mode = #tpu.pipeline_mode<synchronous>, transform_indices = @transform_3, window_bounds = array<i64: 1, 1152>}, {transform_indices = @transform_4, window_bounds = array<i64: 8, 1>}, {transform_indices = @transform_5, window_bounds = array<i64: 8, 1>}, {transform_indices = @transform_6, window_bounds = array<i64: 8, 1>}, {transform_indices = @transform_7, window_bounds = array<i64: 8, 1>}]} {
    %c0 = arith.constant 0 : index
    %c0_0 = arith.constant 0 : index
    %0 = vector.load %arg1[%c0, %c0_0] : memref<8x32xf32, #tpu.memory_space<vmem>>, vector<8x32xf32>
    %c0_1 = arith.constant 0 : index
    %c0_2 = arith.constant 0 : index
    %1 = vector.load %arg3[%c0_1, %c0_2] : memref<32x1152xf32, #tpu.memory_space<vmem>>, vector<32x1152xf32>
    %cst = arith.constant dense<0.000000e+00> : vector<8x1152xf32>
    %2 = tpu.matmul %0, %1, %cst {dimension_numbers = #tpu.dot_dimension_numbers<[1], [0], [0], [1], [0, 0, 1, 1], [], []>} : vector<8x32xf32>, vector<32x1152xf32>, vector<8x1152xf32> -> vector<8x1152xf32>
    %c0_3 = arith.constant 0 : index
    %c0_4 = arith.constant 0 : index
    %3 = vector.load %arg4[%c0_3, %c0_4] : memref<1x1152xf32, #tpu.memory_space<vmem>>, vector<1x1152xf32>
    %4 = vector.broadcast %3 : vector<1x1152xf32> to vector<8x1152xf32>
    %5 = arith.addf %2, %4 : vector<8x1152xf32>
    %c0_5 = arith.constant 0 : index
    %c0_6 = arith.constant 0 : index
    %6 = vector.load %arg2[%c0_5, %c0_6] : memref<8x4xi32, #tpu.memory_space<vmem>>, vector<8x4xi32>
    %7 = tpu.iota {dimensions = array<i32: 1>} : vector<8x4xi32>
    %c0_i32 = arith.constant 0 : i32
    %8 = vector.broadcast %c0_i32 : i32 to vector<8x4xi32>
    %c0_i32_7 = arith.constant 0 : i32
    %9 = vector.broadcast %c0_i32_7 : i32 to vector<8x4xi32>
    %10 = arith.cmpi eq, %7, %9 : vector<8x4xi32>
    %c560_i32 = arith.constant 560 : i32
    %11 = vector.broadcast %c560_i32 : i32 to vector<8x4xi32>
    %12 = arith.cmpi sge, %6, %11 : vector<8x4xi32>
    %13 = arith.andi %10, %12 : vector<8x4xi1>
    %c729_i32 = arith.constant 729 : i32
    %14 = vector.broadcast %c729_i32 : i32 to vector<8x4xi32>
    %15 = arith.cmpi sle, %6, %14 : vector<8x4xi32>
    %16 = arith.andi %13, %15 : vector<8x4xi1>
    %c557_i32 = arith.constant 557 : i32
    %17 = vector.broadcast %c557_i32 : i32 to vector<8x4xi32>
    %18 = arith.select %16, %17, %8 : vector<8x4xi1>, vector<8x4xi32>
    %c0_i32_8 = arith.constant 0 : i32
    %19 = vector.broadcast %c0_i32_8 : i32 to vector<8x4xi32>
    %20 = arith.cmpi eq, %7, %19 : vector<8x4xi32>
    %c432_i32 = arith.constant 432 : i32
    %21 = vector.broadcast %c432_i32 : i32 to vector<8x4xi32>
    %22 = arith.cmpi sge, %6, %21 : vector<8x4xi32>
    %23 = arith.andi %20, %22 : vector<8x4xi1>
    %c559_i32 = arith.constant 559 : i32
    %24 = vector.broadcast %c559_i32 : i32 to vector<8x4xi32>
    %25 = arith.cmpi sle, %6, %24 : vector<8x4xi32>
    %26 = arith.andi %23, %25 : vector<8x4xi1>
    %c260_i32 = arith.constant 260 : i32
    %27 = vector.broadcast %c260_i32 : i32 to vector<8x4xi32>
    %28 = arith.select %26, %27, %18 : vector<8x4xi1>, vector<8x4xi32>
    %c1_i32 = arith.constant 1 : i32
    %29 = vector.broadcast %c1_i32 : i32 to vector<8x4xi32>
    %30 = arith.cmpi eq, %7, %29 : vector<8x4xi32>
    %c195_i32 = arith.constant 195 : i32
    %31 = vector.broadcast %c195_i32 : i32 to vector<8x4xi32>
    %32 = arith.cmpi sge, %6, %31 : vector<8x4xi32>
    %33 = arith.andi %30, %32 : vector<8x4xi1>
    %c303_i32 = arith.constant 303 : i32
    %34 = vector.broadcast %c303_i32 : i32 to vector<8x4xi32>
    %35 = arith.cmpi sle, %6, %34 : vector<8x4xi32>
    %36 = arith.andi %33, %35 : vector<8x4xi1>
    %c194_i32 = arith.constant 194 : i32
    %37 = vector.broadcast %c194_i32 : i32 to vector<8x4xi32>
    %38 = arith.select %36, %37, %28 : vector<8x4xi1>, vector<8x4xi32>
    %c1_i32_9 = arith.constant 1 : i32
    %39 = vector.broadcast %c1_i32_9 : i32 to vector<8x4xi32>
    %40 = arith.cmpi eq, %7, %39 : vector<8x4xi32>
    %c131_i32 = arith.constant 131 : i32
    %41 = vector.broadcast %c131_i32 : i32 to vector<8x4xi32>
    %42 = arith.cmpi sge, %6, %41 : vector<8x4xi32>
    %43 = arith.andi %40, %42 : vector<8x4xi1>
    %c194_i32_10 = arith.constant 194 : i32
    %44 = vector.broadcast %c194_i32_10 : i32 to vector<8x4xi32>
    %45 = arith.cmpi sle, %6, %44 : vector<8x4xi32>
    %46 = arith.andi %43, %45 : vector<8x4xi1>
    %c21_i32 = arith.constant 21 : i32
    %47 = vector.broadcast %c21_i32 : i32 to vector<8x4xi32>
    %48 = arith.select %46, %47, %38 : vector<8x4xi1>, vector<8x4xi32>
    %c2_i32 = arith.constant 2 : i32
    %49 = vector.broadcast %c2_i32 : i32 to vector<8x4xi32>
    %50 = arith.cmpi eq, %7, %49 : vector<8x4xi32>
    %c3_i32 = arith.constant 3 : i32
    %51 = vector.broadcast %c3_i32 : i32 to vector<8x4xi32>
    %52 = arith.cmpi sge, %6, %51 : vector<8x4xi32>
    %53 = arith.andi %50, %52 : vector<8x4xi1>
    %c130_i32 = arith.constant 130 : i32
    %54 = vector.broadcast %c130_i32 : i32 to vector<8x4xi32>
    %55 = arith.cmpi sle, %6, %54 : vector<8x4xi32>
    %56 = arith.andi %53, %55 : vector<8x4xi1>
    %c2_i32_11 = arith.constant 2 : i32
    %57 = vector.broadcast %c2_i32_11 : i32 to vector<8x4xi32>
    %58 = arith.select %56, %57, %48 : vector<8x4xi1>, vector<8x4xi32>
    %c3_i32_12 = arith.constant 3 : i32
    %59 = vector.broadcast %c3_i32_12 : i32 to vector<8x4xi32>
    %60 = arith.cmpi eq, %7, %59 : vector<8x4xi32>
    %c304_i32 = arith.constant 304 : i32
    %61 = vector.broadcast %c304_i32 : i32 to vector<8x4xi32>
    %62 = arith.cmpi sge, %6, %61 : vector<8x4xi32>
    %63 = arith.andi %60, %62 : vector<8x4xi1>
    %c431_i32 = arith.constant 431 : i32
    %64 = vector.broadcast %c431_i32 : i32 to vector<8x4xi32>
    %65 = arith.cmpi sle, %6, %64 : vector<8x4xi32>
    %66 = arith.andi %63, %65 : vector<8x4xi1>
    %c303_i32_13 = arith.constant 303 : i32
    %67 = vector.broadcast %c303_i32_13 : i32 to vector<8x4xi32>
    %68 = arith.select %66, %67, %58 : vector<8x4xi1>, vector<8x4xi32>
    %69 = arith.subi %6, %68 : vector<8x4xi32>
    %70 = vector.extract_strided_slice %5 {offsets = [0, 0], sizes = [8, 384], strides = [1, 1]} : vector<8x1152xf32> to vector<8x384xf32>
    %cst_14 = arith.constant dense<0xFF800000> : vector<8xf32>
    %71 = vector.multi_reduction <maximumf>, %70, %cst_14 [1] : vector<8x384xf32> to vector<8xf32>
    %72 = vector.shape_cast %71 : vector<8xf32> to vector<8x1xf32>
    %73 = vector.broadcast %72 : vector<8x1xf32> to vector<8x384xf32>
    %74 = arith.subf %70, %73 : vector<8x384xf32>
    %75 = math.exp %74 : vector<8x384xf32>
    %cst_15 = arith.constant dense<0.000000e+00> : vector<8xf32>
    %76 = vector.multi_reduction <add>, %75, %cst_15 [1] : vector<8x384xf32> to vector<8xf32>
    %77 = vector.shape_cast %76 : vector<8xf32> to vector<8x1xf32>
    %78 = math.log %77 : vector<8x1xf32>
    %79 = arith.addf %72, %78 : vector<8x1xf32>
    %80 = tpu.iota {dimensions = array<i32: 1>} : vector<8x384xi32>
    %81 = vector.extract_strided_slice %69 {offsets = [0, 0], sizes = [8, 1], strides = [1, 1]} : vector<8x4xi32> to vector<8x1xi32>
    %82 = vector.broadcast %81 : vector<8x1xi32> to vector<8x384xi32>
    %83 = arith.cmpi eq, %80, %82 : vector<8x384xi32>
    %cst_16 = arith.constant 0.000000e+00 : f32
    %84 = vector.broadcast %cst_16 : f32 to vector<8x384xf32>
    %85 = arith.select %83, %70, %84 : vector<8x384xi1>, vector<8x384xf32>
    %cst_17 = arith.constant dense<0.000000e+00> : vector<8xf32>
    %86 = vector.multi_reduction <add>, %85, %cst_17 [1] : vector<8x384xf32> to vector<8xf32>
    %87 = vector.shape_cast %86 : vector<8xf32> to vector<8x1xf32>
    %88 = arith.subf %79, %87 : vector<8x1xf32>
    %c0_18 = arith.constant 0 : index
    %c0_19 = arith.constant 0 : index
    %89 = vector.load %arg5[%c0_18, %c0_19] : memref<8x1xf32, #tpu.memory_space<vmem>>, vector<8x1xf32>
    tpu.vector_store %arg5[%c0_18, %c0_19], %88 {strides = array<i32>} : memref<8x1xf32, #tpu.memory_space<vmem>>, vector<8x1xf32>,
    %90 = vector.extract_strided_slice %5 {offsets = [0, 384], sizes = [8, 256], strides = [1, 1]} : vector<8x1152xf32> to vector<8x256xf32>
    %cst_20 = arith.constant dense<0xFF800000> : vector<8xf32>
    %91 = vector.multi_reduction <maximumf>, %90, %cst_20 [1] : vector<8x256xf32> to vector<8xf32>
    %92 = vector.shape_cast %91 : vector<8xf32> to vector<8x1xf32>
    %93 = vector.broadcast %92 : vector<8x1xf32> to vector<8x256xf32>
    %94 = arith.subf %90, %93 : vector<8x256xf32>
    %95 = math.exp %94 : vector<8x256xf32>
    %cst_21 = arith.constant dense<0.000000e+00> : vector<8xf32>
    %96 = vector.multi_reduction <add>, %95, %cst_21 [1] : vector<8x256xf32> to vector<8xf32>
    %97 = vector.shape_cast %96 : vector<8xf32> to vector<8x1xf32>
    %98 = math.log %97 : vector<8x1xf32>
    %99 = arith.addf %92, %98 : vector<8x1xf32>
    %100 = tpu.iota {dimensions = array<i32: 1>} : vector<8x256xi32>
    %101 = vector.extract_strided_slice %69 {offsets = [0, 1], sizes = [8, 1], strides = [1, 1]} : vector<8x4xi32> to vector<8x1xi32>
    %102 = vector.broadcast %101 : vector<8x1xi32> to vector<8x256xi32>
    %103 = arith.cmpi eq, %100, %102 : vector<8x256xi32>
    %cst_22 = arith.constant 0.000000e+00 : f32
    %104 = vector.broadcast %cst_22 : f32 to vector<8x256xf32>
    %105 = arith.select %103, %90, %104 : vector<8x256xi1>, vector<8x256xf32>
    %cst_23 = arith.constant dense<0.000000e+00> : vector<8xf32>
    %106 = vector.multi_reduction <add>, %105, %cst_23 [1] : vector<8x256xf32> to vector<8xf32>
    %107 = vector.shape_cast %106 : vector<8xf32> to vector<8x1xf32>
    %108 = arith.subf %99, %107 : vector<8x1xf32>
    %c0_24 = arith.constant 0 : index
    %c0_25 = arith.constant 0 : index
    %109 = vector.load %arg6[%c0_24, %c0_25] : memref<8x1xf32, #tpu.memory_space<vmem>>, vector<8x1xf32>
    tpu.vector_store %arg6[%c0_24, %c0_25], %108 {strides = array<i32>} : memref<8x1xf32, #tpu.memory_space<vmem>>, vector<8x1xf32>,
    %110 = vector.extract_strided_slice %5 {offsets = [0, 640], sizes = [8, 256], strides = [1, 1]} : vector<8x1152xf32> to vector<8x256xf32>
    %cst_26 = arith.constant dense<0xFF800000> : vector<8xf32>
    %111 = vector.multi_reduction <maximumf>, %110, %cst_26 [1] : vector<8x256xf32> to vector<8xf32>
    %112 = vector.shape_cast %111 : vector<8xf32> to vector<8x1xf32>
    %113 = vector.broadcast %112 : vector<8x1xf32> to vector<8x256xf32>
    %114 = arith.subf %110, %113 : vector<8x256xf32>
    %115 = math.exp %114 : vector<8x256xf32>
    %cst_27 = arith.constant dense<0.000000e+00> : vector<8xf32>
    %116 = vector.multi_reduction <add>, %115, %cst_27 [1] : vector<8x256xf32> to vector<8xf32>
    %117 = vector.shape_cast %116 : vector<8xf32> to vector<8x1xf32>
    %118 = math.log %117 : vector<8x1xf32>
    %119 = arith.addf %112, %118 : vector<8x1xf32>
    %120 = tpu.iota {dimensions = array<i32: 1>} : vector<8x256xi32>
    %121 = vector.extract_strided_slice %69 {offsets = [0, 2], sizes = [8, 1], strides = [1, 1]} : vector<8x4xi32> to vector<8x1xi32>
    %122 = vector.broadcast %121 : vector<8x1xi32> to vector<8x256xi32>
    %123 = arith.cmpi eq, %120, %122 : vector<8x256xi32>
    %cst_28 = arith.constant 0.000000e+00 : f32
    %124 = vector.broadcast %cst_28 : f32 to vector<8x256xf32>
    %125 = arith.select %123, %110, %124 : vector<8x256xi1>, vector<8x256xf32>
    %cst_29 = arith.constant dense<0.000000e+00> : vector<8xf32>
    %126 = vector.multi_reduction <add>, %125, %cst_29 [1] : vector<8x256xf32> to vector<8xf32>
    %127 = vector.shape_cast %126 : vector<8xf32> to vector<8x1xf32>
    %128 = arith.subf %119, %127 : vector<8x1xf32>
    %c0_30 = arith.constant 0 : index
    %c0_31 = arith.constant 0 : index
    %129 = vector.load %arg7[%c0_30, %c0_31] : memref<8x1xf32, #tpu.memory_space<vmem>>, vector<8x1xf32>
    tpu.vector_store %arg7[%c0_30, %c0_31], %128 {strides = array<i32>} : memref<8x1xf32, #tpu.memory_space<vmem>>, vector<8x1xf32>,
    %130 = vector.extract_strided_slice %5 {offsets = [0, 896], sizes = [8, 256], strides = [1, 1]} : vector<8x1152xf32> to vector<8x256xf32>
    %cst_32 = arith.constant dense<0xFF800000> : vector<8xf32>
    %131 = vector.multi_reduction <maximumf>, %130, %cst_32 [1] : vector<8x256xf32> to vector<8xf32>
    %132 = vector.shape_cast %131 : vector<8xf32> to vector<8x1xf32>
    %133 = vector.broadcast %132 : vector<8x1xf32> to vector<8x256xf32>
    %134 = arith.subf %130, %133 : vector<8x256xf32>
    %135 = math.exp %134 : vector<8x256xf32>
    %cst_33 = arith.constant dense<0.000000e+00> : vector<8xf32>
    %136 = vector.multi_reduction <add>, %135, %cst_33 [1] : vector<8x256xf32> to vector<8xf32>
    %137 = vector.shape_cast %136 : vector<8xf32> to vector<8x1xf32>
    %138 = math.log %137 : vector<8x1xf32>
    %139 = arith.addf %132, %138 : vector<8x1xf32>
    %140 = tpu.iota {dimensions = array<i32: 1>} : vector<8x256xi32>
    %141 = vector.extract_strided_slice %69 {offsets = [0, 3], sizes = [8, 1], strides = [1, 1]} : vector<8x4xi32> to vector<8x1xi32>
    %142 = vector.broadcast %141 : vector<8x1xi32> to vector<8x256xi32>
    %143 = arith.cmpi eq, %140, %142 : vector<8x256xi32>
    %cst_34 = arith.constant 0.000000e+00 : f32
    %144 = vector.broadcast %cst_34 : f32 to vector<8x256xf32>
    %145 = arith.select %143, %130, %144 : vector<8x256xi1>, vector<8x256xf32>
    %cst_35 = arith.constant dense<0.000000e+00> : vector<8xf32>
    %146 = vector.multi_reduction <add>, %145, %cst_35 [1] : vector<8x256xf32> to vector<8xf32>
    %147 = vector.shape_cast %146 : vector<8xf32> to vector<8x1xf32>
    %148 = arith.subf %139, %147 : vector<8x1xf32>
    %c0_36 = arith.constant 0 : index
    %c0_37 = arith.constant 0 : index
    %149 = vector.load %arg8[%c0_36, %c0_37] : memref<8x1xf32, #tpu.memory_space<vmem>>, vector<8x1xf32>
    tpu.vector_store %arg8[%c0_36, %c0_37], %148 {strides = array<i32>} : memref<8x1xf32, #tpu.memory_space<vmem>>, vector<8x1xf32>,
    return
  }
  func.func @transform_0(%arg0: i32) -> (i32, i32) {
    %c0_i32 = arith.constant 0 : i32
    %c0_i32_0 = arith.constant 0 : i32
    return %arg0, %c0_i32 : i32, i32
  }
  func.func @transform_1(%arg0: i32) -> (i32, i32) {
    %c0_i32 = arith.constant 0 : i32
    %c0_i32_0 = arith.constant 0 : i32
    return %arg0, %c0_i32 : i32, i32
  }
  func.func @transform_2(%arg0: i32) -> (i32, i32) {
    %c0_i32 = arith.constant 0 : i32
    %c0_i32_0 = arith.constant 0 : i32
    %c0_i32_1 = arith.constant 0 : i32
    return %c0_i32, %c0_i32_0 : i32, i32
  }
  func.func @transform_3(%arg0: i32) -> (i32, i32) {
    %c0_i32 = arith.constant 0 : i32
    %c0_i32_0 = arith.constant 0 : i32
    %c0_i32_1 = arith.constant 0 : i32
    return %c0_i32, %c0_i32_0 : i32, i32
  }
  func.func @transform_4(%arg0: i32) -> (i32, i32) {
    %c0_i32 = arith.constant 0 : i32
    %c0_i32_0 = arith.constant 0 : i32
    return %arg0, %c0_i32 : i32, i32
  }
  func.func @transform_5(%arg0: i32) -> (i32, i32) {
    %c0_i32 = arith.constant 0 : i32
    %c0_i32_0 = arith.constant 0 : i32
    return %arg0, %c0_i32 : i32, i32
  }
  func.func @transform_6(%arg0: i32) -> (i32, i32) {
    %c0_i32 = arith.constant 0 : i32
    %c0_i32_0 = arith.constant 0 : i32
    return %arg0, %c0_i32 : i32, i32
  }
  func.func @transform_7(%arg0: i32) -> (i32, i32) {
    %c0_i32 = arith.constant 0 : i32
    %c0_i32_0 = arith.constant 0 : i32
    return %arg0, %c0_i32 : i32, i32
  }
}

</mosaic_0001>

<bundles_post_ra>
// kernel: tpu_custom_call.1
= control target key start
LH: loop header
LB: loop body
LE: loop exit
PB: predicated region body
PF: predicated region fallthrough
CT: control target
= control target key end

     0   :  { %13 = vsyncpa [#allocation3], 0  ;;  %s1332_s24 = smov 0   ;;  %s1549_s0 = inlined_call_operand.vmem [shape: f32[16,32], index: 0, kind: input, shape index: {}]   ;;  %s1550_s1 = inlined_call_operand.vmem [shape: s32[16,4], index: 1, kind: input, shape index: {}]   ;;  %s1551_s2 = inlined_call_operand.hbm [shape: f32[32,1152], index: 2, kind: input, shape index: {}]   ;;  %s1552_s3 = inlined_call_operand.vmem [shape: f32[1,1152], index: 3, kind: input, shape index: {}]   ;;  %s1553_s4 = inlined_call_operand.vmem [shape: f32[16,1], index: 4, kind: output, shape index: {0}]   ;;  %s1554_s5 = inlined_call_operand.vmem [shape: f32[16,1], index: 5, kind: output, shape index: {1}]   ;;  %s1555_s6 = inlined_call_operand.vmem [shape: f32[16,1], index: 6, kind: output, shape index: {2}]   ;;  %s1556_s7 = inlined_call_operand.vmem [shape: f32[16,1], index: 7, kind: output, shape index: {3}]  }
   0x1 LB: > { %s1338_s25 = sadd.s32 4294967295, %s1280_s24   ;;  %p1110_p0 = scmp.ge.s32.totalorder %s1280_s24, 1  ;;  %s1280_s24 = sphi %s1332_s24, %s19_s24  }
   0x2   : > { %p222_p1 = scmp.lt.s32.totalorder %s1280_s24, 3  ;;  %s1282_s26 = smov [#allocation2]  }
   0x3   : > { %s234_s27 = sshll.u32 %s1282_s26, 4  ;;  %p1557_p3 = scmp.eq.s32.totalorder %s1338_s25, 0  ;;  %s235_s27 = int_to_ptr.vmem [resolvable:$true] %s234_s27 }
   0x4   : > { %p1342_p2 = pnand %p1110_p0, %p222_p1  ;;  %s1242_s9 = scalar_lea.hbm %s1551_s2, 4608 }
   0x5   : > { %p1243_p6 = scmp.ne.s32.totalorder %s1551_s2, %s1242_s9  ;;  %p1249_p10 = scmp.lt.u32.totalorder %s1242_s9, %s1551_s2 }
   0x6   : > { %s1559_s28 = scalar_select %p1342_p2, 1, 0 }
   0x7   : > { %p1187_p4 = pneg %p1342_p2 }
   0x9   : > { %p1351_p5 = pnand %p1557_p3, %p1187_p4 }
   0xb   : > { %p1244_p7 = pneg %p1351_p5 }
   0xd   : > { %p1245_p8 = pnand %p1244_p7, %p1243_p6 }
   0xf   : > { %p1246_p9 = pneg %p1245_p8 }
  0x11   : > { %p1251_p11 = pnand %p1249_p10, %p1246_p9 }
  0x13   : > { %1254 = shalt.err (!%p1251_p11)
}
  0x14   : > { %s1255_s14 = scalar_lea.vmem %s235_s27, 4608  ;;  %p1263_p1 = scmp.lt.s32.totalorder %s235_s27, %s235_s27 }
  0x15   : > { %p1256_p12 = scmp.ne.s32.totalorder %s235_s27, %s1255_s14  ;;  %p1264_p4 = scmp.lt.s32.totalorder %s1255_s14, %s1255_s14 }
  0x17   : > { %p1258_p13 = pnand %p1256_p12, %p1244_p7  ;;  %p1265_p3 = por %p1264_p4, %p1263_p1 }
  0x19   : > { %p1259_p0 = pneg %p1258_p13 }
  0x1b   : > { %p1266_p2 = pnand %p1265_p3, %p1259_p0 }
  0x1d   : > { %1269 = shalt.err (!%p1266_p2)
}
  0x1e   : > { %s1283_s15 = smov 1152   ;;  %s1284_s16 = smov 72  }
  0x1f   : > { %1190 = dma.hbm_to_vmem [thread:$0]  (!%p1351_p5), %s1551_s2, 4608, %s235_s27, [#allocation3], %s1283_s15, %s1283_s15, %s1284_s16  }
  0x20   : > { %p1561_p6 = scmp.ne.s32.totalorder %s1559_s28, 0 }
  0x21   : > { %p1562_p8 = scmp.eq.s32.totalorder (!%p1561_p6), %s1338_s25, 0 }
  0x22   : > { %267 = sbr.rel (%p1561_p6) target bundleno = 605 (0x25d), region = 36 }
  0x29   : > { %1275 = dma.done.wait (%p1562_p8), [#allocation3], 4608   ;;  %p1563_p7 = pmov %p1562_p8 }
  0x2a   : > { %p313_p2 = scmp.lt.s32.totalorder %s1338_s25, 1  ;;  %v1285_v0 = vmov 0.0   ;;  %v1286_v1 = vmov 0   ;;  %v339_v2 = vld [vmem:[#allocation2 + $0x8] sm:$0xff]  ;;  %v348_v3 = vld [vmem:[#allocation2 + $0x50] sm:$0xff]  ;;  %v338_v4 = vld [vmem:[#allocation2] sm:$0xff]  ;;  %v378_v9 = vlaneseq }
  0x2b   : > { %1277 = vsyncadd (%p1563_p7), [#allocation3], 4294962688  ;;  %491 = vmatprep.mubr.f32.mxu0 %v1285_v0  ;;  %562 = vmatprep.mubr.f32.mxu1 %v1285_v0  ;;  %v1145_v5 = vpack.c.bf16 %v348_v3, %v339_v2  ;;  %v347_v6 = vld [vmem:[#allocation2 + $0x48] sm:$0xff]  ;;  %v341_v7 = vld [vmem:[#allocation2 + $0x18] sm:$0xff]  ;;  %vm423_vm0 = vcmask 261120   ;;  %v1287_v60 = vmov 0.0|0.0  }
  0x2c   : > { %1211 = vset.pattern.permute.xlu1 %v1286_v1  ;;  %s1567_s25 = smov (!%p313_p2, %s1338_s25), 1  ;;  %v350_v8 = vld [vmem:[#allocation2 + $0x60] sm:$0xff]  ;;  %v1147_v10 = vpack.c.bf16 %v347_v6, %v338_v4  ;;  %v340_v12 = vld [vmem:[#allocation2 + $0x10] sm:$0xff]  ;;  %v349_v13 = vld [vmem:[#allocation2 + $0x58] sm:$0xff]  ;;  %v1395_v27 = vand.u32 127, %v378_v9  ;;  %v1289_v6 = vmov 2  }
  0x2d   : > { %s1382_s19 = sshll.u32 %s1567_s25, 3  ;;  %v1153_v11 = vpack.c.bf16 %v350_v8, %v341_v7  ;;  %v357_v14 = vld [vmem:[#allocation2 + $0x98] sm:$0xff]  ;;  %1146 = vmatprep.subr.bf16.mxu0 %v1145_v5  ;;  %v1155_v15 = vpack.c.bf16 %v349_v13, %v340_v12  ;;  %v366_v16 = vld [vmem:[#allocation2 + $0xe0] sm:$0xff]  ;;  %v356_v17 = vld [vmem:[#allocation2 + $0x90] sm:$0xff]  ;;  %v1290_v7 = vmov 1   ;;  %v1291_v8 = vmov 3  }
  0x2e   : > { %s320_s22 = scalar_lea.vmem %s1550_s1, %s1382_s19  ;;  %v365_v18 = vld [vmem:[#allocation2 + $0xd8] sm:$0xff]  ;;  %s316_s26 = scalar_lea.vmem %s1549_s0, %s1382_s19  ;;  %1148 = vmatpush1.bf16.msra.mxu0 %v1147_v10  ;;  %v1149_v19 = vpack.c.bf16 %v366_v16, %v357_v14  ;;  %v359_v21 = vld [vmem:[#allocation2 + $0xa8] sm:$0xff]  ;;  %v368_v22 = vld [vmem:[#allocation2 + $0xf0] sm:$0xff]  ;;  %vm784_vm1 = vcmp.eq.s32.totalorder %v1395_v27, 0  ;;  %vm795_vm8 = vcmp.eq.s32.totalorder %v1395_v27, 1  ;;  %1212 = vset.pattern.permute.xlu0 %v1290_v7 }
  0x2f   : > { %1154 = vmatprep.subr.bf16.mxu1 %v1153_v11  ;;  %v1151_v20 = vpack.c.bf16 %v365_v18, %v356_v17  ;;  %v358_v23 = vld [vmem:[#allocation2 + $0xa0] sm:$0xff]  ;;  %v1157_v24 = vpack.c.bf16 %v368_v22, %v359_v21  ;;  %v367_v25 = vld [vmem:[#allocation2 + $0xe8] sm:$0xff]  ;;  %v352_v31 = vld [vmem:[#allocation2 + $0x70] sm:$0xff]  ;;  %s324_s10 = scalar_lea.vmem %s1553_s4, %s1382_s19  ;;  %s328_s13 = scalar_lea.vmem %s1554_s5, %s1382_s19 }
  0x30   : > { %1156 = vmatpush1.bf16.msra.mxu1 %v1155_v15  ;;  %v1392_v26 = vld [vmem:[%s320_s22] sm:$0xff]  ;;  %1150 = vmatprep.subr.bf16.mxu0 %v1149_v19  ;;  %v1159_v28 = vpack.c.bf16 %v367_v25, %v358_v23  ;;  %v343_v30 = vld [vmem:[#allocation2 + $0x28] sm:$0xff]  ;;  %v345_v35 = vld [vmem:[#allocation2 + $0x38] sm:$0xff]  ;;  %s332_s16 = scalar_lea.vmem %s1555_s6, %s1382_s19  ;;  %s336_s20 = scalar_lea.vmem %s1556_s7, %s1382_s19 }
  0x31   : > { %v1397_v29 = vld [vmem:[%s316_s26] sm:$0xff]  ;;  %1158 = vmatprep.subr.bf16.mxu1 %v1157_v24  ;;  %v1161_v33 = vpack.c.bf16 %v352_v31, %v343_v30  ;;  %v351_v34 = vld [vmem:[#allocation2 + $0x68] sm:$0xff]  ;;  %v344_v39 = vld [vmem:[#allocation2 + $0x30] sm:$0xff]  ;;  %vm785_vm2 = vcmp.ge.s32.totalorder %v1392_v26, 560  ;;  %vm787_vm3 = vcmp.le.s32.totalorder %v1392_v26, 729  ;;  %vm790_vm4 = vcmp.ge.s32.totalorder %v1392_v26, 432 }
  0x32   : > { %v342_v32 = vld [vmem:[#allocation2 + $0x20] sm:$0xff]  ;;  %1152 = vmatpush1.bf16.msra.mxu0 %v1151_v20  ;;  %v353_v40 = vld [vmem:[#allocation2 + $0x78] sm:$0xff]  ;;  %v360_v44 = vld [vmem:[#allocation2 + $0xb0] sm:$0xff]  ;;  %vm792_vm6 = vcmp.le.s32.totalorder %v1392_v26, 559  ;;  %vm796_vm9 = vcmp.ge.s32.totalorder %v1392_v26, 195  ;;  %vm798_vm11 = vcmp.le.s32.totalorder %v1392_v26, 303 }
  0x33   : > { %v354_v36 = vld [vmem:[#allocation2 + $0x80] sm:$0xff]  ;;  %v1163_v37 = vpack.c.bf16 %v351_v34, %v342_v32  ;;  %v361_v41 = vld [vmem:[#allocation2 + $0xb8] sm:$0xff]  ;;  %1162 = vmatprep.subr.bf16.mxu0 %v1161_v33  ;;  %v1171_v42 = vpack.c.bf16 %v353_v40, %v344_v39  ;;  %v363_v47 = vld [vmem:[#allocation2 + $0xc8] sm:$0xff]  ;;  %vm801_vm13 = vcmp.ge.s32.totalorder %v1392_v26, 131  ;;  %vm803_vm15 = vcmp.le.s32.totalorder %v1392_v26, 194 }
  0x34   : > { %v1169_v38 = vpack.c.bf16 %v354_v36, %v345_v35  ;;  %1160 = vmatpush1.bf16.msra.mxu1 %v1159_v28  ;;  %v370_v43 = vld [vmem:[#allocation2 + $0x100] sm:$0xff]  ;;  %v369_v45 = vld [vmem:[#allocation2 + $0xf8] sm:$0xff]  ;;  %v372_v48 = vld [vmem:[#allocation2 + $0x110] sm:$0xff] }
  0x35   : > { %v1165_v46 = vpack.c.bf16 %v370_v43, %v361_v41  ;;  %v362_v49 = vld [vmem:[#allocation2 + $0xc0] sm:$0xff]  ;;  %1122 = vmatmul.mubr.msk.f32.vlgmr.msra.gmra.mrb[0].mxu0 %vm423_vm0, %v1397_v29  ;;  %v1173_v50 = vpack.c.bf16 %v372_v48, %v363_v47  ;;  %v371_v51 = vld [vmem:[#allocation2 + $0x108] sm:$0xff]  ;;  %v1167_v52 = vpack.c.bf16 %v369_v45, %v360_v44  ;;  %vm786_vm5 = vmand %vm784_vm1, %vm785_vm2  ;;  %vm806_vm2 = vcmp.eq.s32.totalorder %v1395_v27, 2 }
  0x36   : > { %1170 = vmatprep.subr.bf16.mxu1 %v1169_v38  ;;  %1164 = vmatpush1.bf16.msra.mxu0 %v1163_v37  ;;  %v1175_v53 = vpack.c.bf16 %v371_v51, %v362_v49  ;;  %v346_v54 = vld [vmem:[#allocation2 + $0x40] sm:$0xff]  ;;  %v355_v55 = vld [vmem:[#allocation2 + $0x88] sm:$0xff]  ;;  %vm788_vm7 = vmand %vm786_vm5, %vm787_vm3  ;;  %vm807_vm3 = vcmp.ge.s32.totalorder %v1392_v26, 3  ;;  %vm809_vm5 = vcmp.le.s32.totalorder %v1392_v26, 130 }
  0x37   : > { %1123 = vmatmul.mubr.msk.f32.vlgmr.msra.gmra.mrb[0].mxu1 %vm423_vm0, %v1397_v29  ;;  %1166 = vmatprep.subr.bf16.mxu0 %v1165_v46  ;;  %v789_v56 = vsel %vm788_vm7, 557, %v1286_v1  ;;  %vm791_vm10 = vmand %vm784_vm1, %vm790_vm4  ;;  %v1178_v58 = vpack.c.bf16 %v355_v55, %v346_v54  ;;  %v364_v61 = vld [vmem:[#allocation2 + $0xd0] sm:$0xff]  ;;  %v373_v62 = vld [vmem:[#allocation2 + $0x118] sm:$0xff]  ;;  %vm812_vm7 = vcmp.eq.s32.totalorder %v1395_v27, 3  ;;  %v840_v54 = vadd.s32 256, %v1395_v27 }
  0x38   : > { %1172 = vmatpush1.bf16.msra.mxu1 %v1171_v42  ;;  %633 = vmatprep.mubr.f32.mxu0 %v1285_v0  ;;  %vm1424_vm12 = vmand %vm791_vm10, %vm792_vm6  ;;  %v1181_v1 = vpack.c.bf16 %v373_v62, %v364_v61  ;;  %v374_v11 = vld [vmem:[%s1552_s3] sm:$0xff]  ;;  %v1121_v47 = vld [vmem:[%s1552_s3 + $0x8] ss:$0 sm:$0xff] }
  0x39   : > { %1174 = vmatprep.subr.bf16.mxu1 %v1173_v50  ;;  %704 = vmatprep.mubr.f32.mxu1 %v1285_v0  ;;  %v794_v59 = vsel %vm1424_vm12, 260, %v789_v56  ;;  %vm797_vm14 = vmand %vm795_vm8, %vm796_vm9  ;;  %vm813_vm9 = vcmp.ge.s32.totalorder %v1392_v26, 304 }
  0x3a   : > { %1168 = vmatpush1.bf16.msra.mxu0 %v1167_v52  ;;  %vm799_vm1 = vmand %vm797_vm14, %vm798_vm11  ;;  %vm815_vm11 = vcmp.le.s32.totalorder %v1392_v26, 431  ;;  %v1478_v52 = vadd.s32 128, %v1395_v27 }
  0x3b   : > { %1177 = vmatprep.subr.bf16.mxu0 %v1287_v60  ;;  %v800_v63 = vsel %vm799_vm1, 194, %v794_v59  ;;  %vm802_vm4 = vmand %vm795_vm8, %vm801_vm13  ;;  %vm1288_vm8 = vmmov 0  }
  0x3c   : > { %1176 = vmatpush1.bf16.msra.mxu1 %v1175_v53  ;;  %vm804_vm6 = vmand %vm802_vm4, %vm803_vm15 }
  0x3d   : > { %1124 = vmatmul.mubr.msk.f32.vlgmr.msra.gmra.mrb[2].mxu0 %vm423_vm0, %v1397_v29  ;;  %v805_v2 = vsel %vm804_vm6, 21, %v800_v63  ;;  %vm808_vm10 = vmand %vm806_vm2, %vm807_vm3 }
  0x3e   : > { %1179 = vmatpush3.bf16.msra.mxu0 %v1178_v58  ;;  %1142 = vmatprep.mubr.msk.f32.mxu0 %vm1288_vm8, %v1285_v0  ;;  %vm810_vm12 = vmand %vm808_vm10, %vm809_vm5  ;;  %v379_v0 = vshrl.u32 %v378_v9, 7 }
  0x3f   : > { %1125 = vmatmul.mubr.msk.f32.vlgmr.msra.gmra.mrb[2].mxu1 %vm423_vm0, %v1397_v29  ;;  %1180 = vmatprep.subr.bf16.mxu0 %v1287_v60  ;;  %v811_v3 = vsel %vm810_vm12, 2, %v805_v2  ;;  %vm814_vm13 = vmand %vm812_vm7, %vm813_vm9  ;;  %vm855_vm9 = vcmask 7168  }
  0x40   : > { %vm816_vm14 = vmand %vm814_vm13, %vm815_vm11  ;;  %v380_v10 = vsub.s32 0, %v379_v0  ;;  %v384_v12 = vsub.s32 1, %v379_v0  ;;  %v388_v13 = vsub.s32 2, %v379_v0  ;;  %v392_v14 = vsub.s32 3, %v379_v0 }
  0x41   : > { %v817_v4 = vsel %vm816_vm14, 303, %v811_v3  ;;  %v396_v23 = vsub.s32 4, %v379_v0  ;;  %v404_v28 = vsub.s32 6, %v379_v0  ;;  %v408_v30 = vsub.s32 7, %v379_v0 }
  0x42   : > { %1182 = vmatpush3.bf16.msra.mxu0 %v1181_v1  ;;  %v818_v5 = vsub.s32 %v1392_v26, %v817_v4  ;;  %v381_v15 = vrot.slane %v374_v11, %v380_v10  ;;  %v385_v16 = vrot.slane %v374_v11, %v384_v12  ;;  %v389_v17 = vrot.slane %v374_v11, %v388_v13 }
  0x43   : > { %v393_v18 = vrot.slane %v374_v11, %v392_v14  ;;  %v400_v26 = vsub.s32 5, %v379_v0  ;;  %v397_v32 = vrot.slane %v374_v11, %v396_v23  ;;  %v405_v35 = vrot.slane %v374_v11, %v404_v28 }
  0x44   : > { %842 = vperm.xlu1 %1211, %v818_v5   ;;  %v409_v36 = vrot.slane %v374_v11, %v408_v30 }
  0x45   : > { %1143 = vmatmul.mubr.msk.f32.vlgmr.msra.gmra.mrb[4].mxu0 %vm423_vm0, %v1397_v29  ;;  %v401_v34 = vrot.slane %v374_v11, %v400_v26 }
  0x48   : > { %1213 = vset.pattern.permute.xlu1 %v1289_v6 }
  0x49   : > { %900 = vperm.xlu1 %1213, %v818_v5  }
  0x4d   : > { %1214 = vset.pattern.permute.xlu1 %v1291_v8 }
  0xc3   : > { %v843_v53 = vpop.permute.xlu1 %842 }
  0xc4   : > { %vm844_vm0 = vcmp.eq.s32.totalorder %v1395_v27, %v843_v53  ;;  %vm845_vm15 = vcmp.eq.s32.totalorder %v1478_v52, %v843_v53  ;;  %vm846_vm1 = vcmp.eq.s32.totalorder %v840_v54, %v843_v53 }
  0xc8   : > { %v901_v1 = vpop.permute.xlu1 %900 }
  0xc9   : > { %vm902_vm2 = vcmp.eq.s32.totalorder %v1395_v27, %v901_v1  ;;  %vm903_vm3 = vcmp.eq.s32.totalorder %v1478_v52, %v901_v1 }
 0x108   : > { %v493_v19 = vpop.f32.mrb[0].mxu0 }
 0x109   : > { %v494_v20 = vadd.f32 %v493_v19, %v381_v15  ;;  %v495_v21 = vpop.f32.mrb[1].mxu0 }
 0x10a   : > { %v564_v22 = vpop.f32.mrb[0].mxu1  ;;  %v496_v24 = vadd.f32 %v495_v21, %v385_v16 }
 0x10b   : > { %v565_v25 = vadd.f32 %v564_v22, %v389_v17  ;;  %v566_v9 = vpop.f32.mrb[1].mxu1  ;;  %v847_v55 = vsel %vm844_vm0, %v494_v20, 0.0 }
 0x10c   : > { %v1456_v29 = vadd.f32 %v566_v9, %v393_v18  ;;  %v819_v31 = vmax.f32 %v494_v20, %v496_v24  ;;  %v848_v56 = vsel %vm845_vm15, %v496_v24, 0.0 }
 0x10d   : > { %v850_v57 = vadd.f32 %v848_v56, %v847_v55  ;;  %v849_v58 = vsel %vm846_vm1, %v565_v25, 0.0 }
 0x10e   : > { %v820_v33 = vmax.f32 %v819_v31, %v565_v25 }
 0x10f   : > { %v851_v59 = vadd.f32 %v850_v57, %v849_v58 }
 0x110   : > { %v635_v37 = vpop.f32.mrb[2].mxu0  ;;  %821 = vmax.xlane.f32.xlu0 %v820_v33 }
 0x111   : > { %v1458_v38 = vadd.f32 %v635_v37, %v397_v32  ;;  %v637_v39 = vpop.f32.mrb[3].mxu0 }
 0x112   : > { %v706_v40 = vpop.f32.mrb[2].mxu1  ;;  %v1460_v41 = vadd.f32 %v637_v39, %v401_v34 }
 0x113   : > { %v1462_v42 = vadd.f32 %v706_v40, %v405_v35  ;;  %v708_v43 = vpop.f32.mrb[3].mxu1  ;;  %v857_v45 = vmax.f32 %v1456_v29, %v1458_v38 }
 0x114   : > { %v1464_v44 = vadd.f32 %v708_v43, %v409_v36  ;;  %v904_v26 = vsel %vm902_vm2, %v1460_v41, 0.0 }
 0x115   : > { %v884_v46 = vmax.f32 %v1460_v41, %v1462_v42  ;;  %858 = vmax.xlane.f32.xlu0 %v857_v45  ;;  %v905_v28 = vsel %vm903_vm3, %v1462_v42, 0.0 }
 0x116   : > { %v906_v32 = vadd.f32 %v905_v28, %v904_v26 }
 0x117   : > { %885 = vmax.xlane.f32.xlu1 %v884_v46 }
 0x118   : > { %v777_v48 = vpop.f32.mrb[4].mxu0 }
 0x119   : > { %v1473_v49 = vadd.f32 %v1121_v47, %v777_v48  ;;  %v1144_v50 = vpop.f32.mrb[5].mxu0 }
 0x11b   : > { %v911_v51 = vmax.f32 %v1464_v44, %v1473_v49 }
 0x11d   : > { %912 = vmax.xlane.f32.xlu1 %v911_v51 }
 0x12b   : > { %873 = vperm.xlu0 %1212, %v818_v5  }
 0x12e   : > { %927 = vperm.xlu1 %1214, %v818_v5  }
 0x12f   : > { %1215 = vset.pattern.permute.xlu0 %v1291_v8 }
 0x152   : > { %852 = vadd.xlane.f32.xlu1 %v851_v59 }
 0x19d   : > { %v1483_v60 = vpop.xlane.xlu0 %821 }
 0x19e   : > { %v823_v61 = vsub.f32 %v494_v20, %v1483_v60  ;;  %v824_v62 = vsub.f32 %v496_v24, %v1483_v60  ;;  %v825_v63 = vsub.f32 %v565_v25, %v1483_v60 }
 0x1a0   : > { %v826_v2 = vmul.f32 1.442695, %v823_v61  ;;  %v828_v3 = vmul.f32 1.442695, %v824_v62  ;;  %v830_v4 = vmul.f32 1.442695, %v825_v63 }
 0x1a2   : > { %1216 = vpow2.f32 %v826_v2  ;;  %v1488_v5 = vpop.xlane.xlu0 %858 }
 0x1a3   : > { %1218 = vpow2.f32 %v828_v3  ;;  %v860_v6 = vsub.f32 %v1456_v29, %v1488_v5  ;;  %v861_v7 = vsub.f32 %v1458_v38, %v1488_v5 }
 0x1a4   : > { %v1494_v8 = vpop.xlane.xlu1 %885  ;;  %1220 = vpow2.f32 %v830_v4 }
 0x1a5   : > { %v887_v0 = vsub.f32 %v1460_v41, %v1494_v8  ;;  %v888_v10 = vsub.f32 %v1462_v42, %v1494_v8  ;;  %v862_v11 = vmul.f32 1.442695, %v860_v6  ;;  %v864_v12 = vmul.f32 1.442695, %v861_v7 }
 0x1a7   : > { %v889_v13 = vmul.f32 1.442695, %v887_v0  ;;  %v891_v14 = vmul.f32 1.442695, %v888_v10  ;;  %1222 = vpow2.f32 %v862_v11 }
 0x1a8   : > { %1224 = vpow2.f32 %v864_v12 }
 0x1a9   : > { %1226 = vpow2.f32 %v889_v13 }
 0x1aa   : > { %1228 = vpow2.f32 %v891_v14  ;;  %v1502_v15 = vpop.xlane.xlu1 %912  ;;  %v874_v16 = vpop.permute.xlu0 %873 }
 0x1ab   : > { %v914_v17 = vsub.f32 %v1464_v44, %v1502_v15  ;;  %v915_v18 = vsub.f32 %v1473_v49, %v1502_v15  ;;  %vm875_vm4 = vcmp.eq.s32.totalorder %v1395_v27, %v874_v16  ;;  %vm876_vm5 = vcmp.eq.s32.totalorder %v1478_v52, %v874_v16 }
 0x1ac   : > { %v1217_v19 = vpop.eup %1216  ;;  %v877_v20 = vsel %vm875_vm4, %v1456_v29, 0.0  ;;  %v878_v21 = vsel %vm876_vm5, %v1458_v38, 0.0 }
 0x1ad   : > { %v1219_v22 = vpop.eup %1218  ;;  %v916_v23 = vmul.f32 1.442695, %v914_v17  ;;  %v918_v24 = vmul.f32 1.442695, %v915_v18  ;;  %v879_v25 = vadd.f32 %v878_v21, %v877_v20 }
 0x1ae   : > { %v832_v9 = vadd.f32 %v1219_v22, %v1217_v19  ;;  %v1221_v30 = vpop.eup %1220  ;;  %v928_v38 = vpop.permute.xlu1 %927 }
 0x1af   : > { %1230 = vpow2.f32 %v916_v23  ;;  %880 = vadd.xlane.f32.xlu1 %v879_v25  ;;  %vm929_vm6 = vcmp.eq.s32.totalorder %v1395_v27, %v928_v38  ;;  %vm930_vm7 = vcmp.eq.s32.totalorder %v1478_v52, %v928_v38 }
 0x1b0   : > { %1232 = vpow2.f32 %v918_v24  ;;  %v833_v29 = vadd.f32 %v1221_v30, %v832_v9  ;;  %v931_v42 = vsel %vm929_vm6, %v1464_v44, 0.0  ;;  %v932_v43 = vsel %vm930_vm7, %v1473_v49, 0.0 }
 0x1b1   : > { %v1223_v31 = vpop.eup %1222  ;;  %v933_v45 = vadd.f32 %v932_v43, %v931_v42 }
 0x1b2   : > { %v1225_v33 = vpop.eup %1224  ;;  %834 = vadd.xlane.f32.xlu0 %v833_v29 }
 0x1b3   : > { %v1227_v34 = vpop.eup %1226  ;;  %907 = vadd.xlane.f32.xlu1 %v906_v32  ;;  %v866_v35 = vadd.f32 %v1225_v33, %v1223_v31 }
 0x1b4   : > { %v1229_v36 = vpop.eup %1228 }
 0x1b5   : > { %v893_v37 = vadd.f32 %v1229_v36, %v1227_v34 }
 0x1b6   : > { %867 = vadd.xlane.f32.xlu0 %v866_v35 }
 0x1b7   : > { %894 = vadd.xlane.f32.xlu1 %v893_v37 }
 0x1b9   : > { %v1231_v39 = vpop.eup %1230 }
 0x1ba   : > { %v1233_v40 = vpop.eup %1232 }
 0x1bb   : > { %v920_v41 = vadd.f32 %v1233_v40, %v1231_v39 }
 0x1bd   : > { %921 = vadd.xlane.f32.xlu1 %v920_v41 }
 0x1c1   : > { %934 = vadd.xlane.f32.xlu1 %v933_v45 }
 0x1df   : > { %v853_v46 = vpop.xlane.xlu1 %852 }
 0x23c   : > { %v881_v47 = vpop.xlane.xlu1 %880 }
 0x23f   : > { %v835_v48 = vpop.xlane.xlu0 %834 }
 0x240   : > { %1234 = vlog2.f32 %v835_v48  ;;  %v908_v50 = vpop.xlane.xlu1 %907 }
 0x243   : > { %v868_v51 = vpop.xlane.xlu0 %867 }
 0x244   : > { %1236 = vlog2.f32 %v868_v51  ;;  %v895_v27 = vpop.xlane.xlu1 %894 }
 0x245   : > { %1238 = vlog2.f32 %v895_v27 }
 0x24a   : > { %v1235_v52 = vpop.eup %1234  ;;  %v922_v53 = vpop.xlane.xlu1 %921 }
 0x24b   : > { %v837_v44 = vmul.f32 0.6931472, %v1235_v52  ;;  %1240 = vlog2.f32 %v922_v53 }
 0x24d   : > { %v838_v49 = vadd.f32 %v837_v44, %v1483_v60 }
 0x24e   : > { %v1237_v54 = vpop.eup %1236  ;;  %v935_v3 = vpop.xlane.xlu1 %934 }
 0x24f   : > { %v1239_v55 = vpop.eup %1238  ;;  %v854_v56 = vsub.f32 %v838_v49, %v853_v46  ;;  %v870_v57 = vmul.f32 0.6931472, %v1237_v54 }
 0x250   : > { %v897_v58 = vmul.f32 0.6931472, %v1239_v55 }
 0x251   : > { %v871_v59 = vadd.f32 %v870_v57, %v1488_v5  ;;  %856 = vst.msk [vmem:[%s324_s10] sm:$0xff] %vm855_vm9, %v854_v56 }
 0x252   : > { %v898_v61 = vadd.f32 %v897_v58, %v1494_v8 }
 0x253   : > { %v882_v60 = vsub.f32 %v871_v59, %v881_v47 }
 0x254   : > { %v909_v62 = vsub.f32 %v898_v61, %v908_v50 }
 0x255   : > { %v1241_v63 = vpop.eup %1240  ;;  %883 = vst.msk [vmem:[%s328_s13] sm:$0xff] %vm855_vm9, %v882_v60 }
 0x256   : > { %v924_v1 = vmul.f32 0.6931472, %v1241_v63  ;;  %910 = vst.msk [vmem:[%s332_s16] sm:$0xff] %vm855_vm9, %v909_v62 }
 0x258   : > { %v925_v2 = vadd.f32 %v924_v1, %v1502_v15 }
 0x25a   : > { %v936_v4 = vsub.f32 %v925_v2, %v935_v3 }
 0x25c   : > { %937 = vst.msk [vmem:[%s336_s20] sm:$0xff] %vm855_vm9, %v936_v4 }
 0x25d PF: > { %s19_s24 = sadd.s32 1, %s1280_s24  }
 0x25e   : > { %p16_p3 = scmp.ge.s32.totalorder %s19_s24, 4  }
 0x260   :  { %18 = sbr.rel (!%p16_p3) target bundleno = 1 (0x1), region = 110 }
 0x267   :  { %999 = vsyncpa [#allocation3], 1 }
 0x268   :  { %1001 = vsyncpa [#allocation3 + $0x1], 1 }

</bundles_post_ra>
